<compile_context>
chip_gen: v6e
topology: v6e:2x2x1
jax: 0.10.0
libtpu: 0.0.40
codegen_flags: <defaults>
</compile_context>

<pallas_src>
import functools

import jax
import jax.numpy as jnp
from jax.experimental import pallas as pl
from jax.experimental.pallas import tpu as pltpu


def _round_up(x: int, m: int) -> int:
    return ((x + m - 1) // m) * m


def _cdiv(a: int, b: int) -> int:
    return (a + b - 1) // b


def _vmem_capacity_bytes() -> int:
    """Physical VMEM of the current chip; conservative 64 MiB fallback (v7x)."""
    try:
        cap = getattr(pltpu.get_tpu_info(), "vmem_capacity_bytes", None)
        if cap:
            return int(cap)
    except Exception:
        pass
    return 64 * 1024 * 1024


def _choose_row_tile(n: int, n_cols_pad: int, vmem_bytes: int) -> int:
    """Row tile (multiple of 8) for the adjacency kernel.

    Generation-aware per-tile budget: ~2 MiB on 64 MiB-VMEM chips (v7x),
    ~6 MiB on 128 MiB chips (v5e/v6e) so fewer, larger tiles amortize the
    ~0.35 us/step overhead.  Capped so the grid keeps >= 2 steps (megacore)."""
    rows8 = _round_up(max(n, 8), 8)
    budget = (2 << 20) if vmem_bytes <= (64 << 20) else (6 << 20)
    tm = (budget // (n_cols_pad * 4)) // 8 * 8
    tm = max(8, min(tm, rows8, 1024))
    if rows8 >= 16:  # keep at least 2 grid steps when there are enough rows
        tm = min(tm, _round_up((rows8 + 1) // 2, 8))
    return tm


def _choose_embed_tile(n_h_pad: int, dim_pad: int) -> int:
    budget = 4 << 20
    for tr in (512, 256, 128, 64, 32, 16, 8):
        if n_h_pad % tr == 0 and tr * dim_pad * 4 <= budget:
            return tr
    return 8


def _node_embed_kernel(x_ref, w_ref, b_ref, h_ref, *, alpha, n_real, tr):
    # x_ref: (TR, dim_pad)      gathered node embeddings (zero padded), pipelined
    # w_ref: (dim_pad, dim_pad) lin1 weight (in, out) layout, resident in VMEM
    # b_ref: (1, dim_pad)       lin1 bias, resident in VMEM
    # h_ref: (TR, dim_pad)      h = tanh(alpha * lin1(x)); rows >= n_real zeroed
    x = x_ref[...]
    h = jnp.tanh(alpha * (jnp.dot(x, w_ref[...],
                                  preferred_element_type=jnp.float32) + b_ref[...]))
    row = pl.program_id(0) * tr + jax.lax.broadcasted_iota(jnp.int32, h.shape, 0)
    h_ref[...] = jnp.where(row < n_real, h, 0.0).astype(h_ref.dtype)


def _adj_topk_kernel(h_ref, ht_ref, o_ref, *, alpha, k):
    # h_ref : (TM, dim_pad)     rows of h for this tile (pipelined per grid step)
    # ht_ref: (dim_pad, N_pad)  resident h^T (single VMEM copy, never re-DMA'd)
    # o_ref : (TM, N_pad)       masked adjacency rows (lane-dense store)
    a = jnp.dot(h_ref[...], ht_ref[...], preferred_element_type=jnp.float32)
    adj = jnp.maximum(jnp.tanh(alpha * a), 0.0)           # relu(tanh(alpha*a)) in [0,1]

    _, n_pad = adj.shape
    # Column ids as a (1, N_pad) row (exact f32 for n_pad < 2^24); broadcast in
    # the compares instead of materializing a full (TM, N_pad) constant tile.
    colf = jax.lax.broadcasted_iota(jnp.int32, (1, n_pad), 1).astype(jnp.float32)
    sentinel = float(n_pad)

    # Exact top-k per row: peel the row max k times, ties broken by lowest
    # column index (matches jax.lax.top_k / torch.topk).  The selected entry is
    # overwritten with -(value + 1) (adj >= 0, so this is a safe sub-zero
    # sentinel), which keeps a single (TM, N_pad) array live and lets the final
    # store recover the masked row as max(-work - 1, 0).
    # k is small & static; switch to lax.fori_loop(..., unroll=True) carrying
    # (work,) if k grows past ~8.
    work = adj
    for _ in range(k):
        thr = jnp.max(work, axis=1, keepdims=True)                          # (TM, 1)
        first = jnp.min(jnp.where(work == thr, colf, sentinel),
                        axis=1, keepdims=True)                              # (TM, 1)
        sel = colf == first                    # exactly one column per row
        work = jnp.where(sel, -(thr + 1.0), work)

    # Selected columns: -work - 1 == adj value; everything else: -adj - 1 < 0.
    o_ref[...] = jnp.maximum(-work - 1.0, 0.0).astype(o_ref.dtype)


def graph_undirected_forward(idx, emb_weight, lin_weight, lin_bias, *, alpha, k):
    """JAX/Pallas forward matching graph_undirected.forward (static_feat=None)."""
    idx = jnp.asarray(idx)
    emb_weight = jnp.asarray(emb_weight, jnp.float32)
    lin_weight = jnp.asarray(lin_weight, jnp.float32)
    lin_bias = jnp.asarray(lin_bias, jnp.float32)

    n = int(idx.shape[0])
    dim = int(emb_weight.shape[1])
    assert 0 < k <= n, "top-k requires 0 < k <= number of selected nodes"

    vmem_bytes = _vmem_capacity_bytes()
    n_cols_pad = _round_up(max(n, 8), 128)              # lane-dense output last dim
    dim_pad = _round_up(dim, 128)                       # aligned contraction dim
    tm = _choose_row_tile(n, n_cols_pad, vmem_bytes)
    n_rows_pad = _cdiv(n, tm) * tm                      # rows only need tile (8) align
    n_h_pad = _round_up(max(n_rows_pad, n_cols_pad), tm)
    tr = _choose_embed_tile(n_h_pad, dim_pad)

    # Glue: embedding gather + layout prep.  Zero padding is inert: padded W
    # columns / bias entries are 0 and padded h rows are zeroed in-kernel, so
    # padded adjacency columns are exactly 0 and can never displace a real
    # positive top-k hit.
    nodevec = emb_weight[idx]                                               # (n, dim)
    x_pad = jnp.zeros((n_h_pad, dim_pad), jnp.float32).at[:n, :dim].set(nodevec)
    w_pad = jnp.zeros((dim_pad, dim_pad), jnp.float32).at[:dim, :dim].set(lin_weight.T)
    b_pad = jnp.zeros((1, dim_pad), jnp.float32).at[0, :dim].set(lin_bias)

    vmem_full = pl.BlockSpec(memory_space=pltpu.MemorySpace.VMEM)

    # Kernel 1: h = tanh(alpha * lin1(emb(idx))), row-tiled (W, b resident).
    h = pl.pallas_call(
        functools.partial(_node_embed_kernel, alpha=float(alpha), n_real=n, tr=tr),
        out_shape=jax.ShapeDtypeStruct((n_h_pad, dim_pad), jnp.float32),
        grid_spec=pltpu.PrefetchScalarGridSpec(
            num_scalar_prefetch=0,
            grid=(n_h_pad // tr,),
            in_specs=[
                pl.BlockSpec((tr, dim_pad), lambda i: (i, 0)),   # node rows (pipelined)
                vmem_full,                                        # W (resident)
                vmem_full,                                        # b (resident)
            ],
            out_specs=pl.BlockSpec((tr, dim_pad), lambda i: (i, 0)),
        ),
        compiler_params=pltpu.CompilerParams(dimension_semantics=("parallel",)),
    )(x_pad, w_pad, b_pad)

    # Layout-only glue: one-off transpose so every grid step runs the canonical
    # (TM, dim) @ (dim, N) MXU matmul with a lane-dense (TM, N_pad) result.
    ht = (h if n_h_pad == n_cols_pad else h[:n_cols_pad]).T    # (dim_pad, n_cols_pad)

    # VMEM budget: 2x double-buffered in/out row tiles + resident h^T (single
    # copy) + ~4x out-tile headroom for the peel-loop temporaries.
    out_tile = tm * n_cols_pad * 4
    hrow_tile = tm * dim_pad * 4
    ht_bytes = dim_pad * n_cols_pad * 4
    need = 2 * out_tile + 2 * hrow_tile + ht_bytes + 4 * out_tile + (2 << 20)
    vmem_limit = int(min(max(need, 32 << 20), int(vmem_bytes * 0.9), 128 << 20))

    grid = (n_rows_pad // tm,)
    adj = pl.pallas_call(
        functools.partial(_adj_topk_kernel, alpha=float(alpha), k=int(k)),
        out_shape=jax.ShapeDtypeStruct((n_rows_pad, n_cols_pad), jnp.float32),
        grid_spec=pltpu.PrefetchScalarGridSpec(
            num_scalar_prefetch=0,
            grid=grid,
            in_specs=[
                pl.BlockSpec((tm, dim_pad), lambda i: (i, 0)),   # h rows (pipelined)
                vmem_full,                                        # resident h^T, 1 buffer
            ],
            out_specs=pl.BlockSpec((tm, n_cols_pad), lambda i: (i, 0)),  # lane-dense rows
        ),
        compiler_params=pltpu.CompilerParams(
            dimension_semantics=("parallel",),   # megacore on v7x; harmless on v5e/v6e
            vmem_limit_bytes=vmem_limit,
        ),
        cost_estimate=pl.CostEstimate(
            flops=2 * n_rows_pad * n_cols_pad * dim_pad,
            transcendentals=n_rows_pad * n_cols_pad,
            bytes_accessed=4 * (n_rows_pad * n_cols_pad + n_rows_pad * dim_pad
                                + dim_pad * n_cols_pad),
        ),
    )(h, ht)

    return adj[:n, :n]


def _reference_forward(idx, emb_weight, lin_weight, lin_bias, *, alpha, k):
    """Pure-JAX reference mirroring the torch module (static_feat=None)."""
    nodevec = emb_weight[idx]
    h = jnp.tanh(alpha * (jnp.dot(nodevec, lin_weight.T,
                                  precision=jax.lax.Precision.HIGHEST) + lin_bias))
    a = jnp.dot(h, h.T, precision=jax.lax.Precision.HIGHEST)
    adj = jax.nn.relu(jnp.tanh(alpha * a))
    _, t1 = jax.lax.top_k(adj, k)
    mask = jnp.zeros_like(adj).at[jnp.arange(adj.shape[0])[:, None], t1].set(1.0)
    return adj * mask


if __name__ == "__main__":
    nnodes, dim, k, alpha = 20, 32, 4, 3.0

    key = jax.random.PRNGKey(0)
    k_emb, k_w, k_b = jax.random.split(key, 3)

    # Deterministic synthetic parameters (shapes match the torch module).
    # Scales keep tanh(alpha * .) away from exact f32 saturation so the top-k
    # ordering is well-conditioned for a cross-implementation fp comparison.
    emb_weight = 0.05 * jax.random.normal(k_emb, (nnodes, dim), dtype=jnp.float32)
    lin_weight = jax.random.normal(k_w, (dim, dim), dtype=jnp.float32) * (1.0 / jnp.sqrt(dim))
    lin_bias = 0.02 * jax.random.normal(k_b, (dim,), dtype=jnp.float32)

    # Case 1: n = 16 selected nodes (8-aligned, multi-step grid).
    idx16 = jnp.arange(16, dtype=jnp.int32)
    out16 = jax.block_until_ready(
        graph_undirected_forward(idx16, emb_weight, lin_weight, lin_bias,
                                 alpha=alpha, k=k))
    ref16 = _reference_forward(idx16, emb_weight, lin_weight, lin_bias,
                               alpha=alpha, k=k)
    assert out16.shape == (16, 16)
    assert bool(jnp.allclose(out16, ref16, atol=1e-4, rtol=1e-4)), "mismatch (n=16)"

    # Case 2: n = 20 (not 8-aligned) exercises the independent row padding path.
    idx20 = jnp.arange(20, dtype=jnp.int32)
    out20 = jax.block_until_ready(
        graph_undirected_forward(idx20, emb_weight, lin_weight, lin_bias,
                                 alpha=alpha, k=k))
    ref20 = _reference_forward(idx20, emb_weight, lin_weight, lin_bias,
                               alpha=alpha, k=k)
    assert out20.shape == (20, 20)
    assert bool(jnp.allclose(out20, ref20, atol=1e-4, rtol=1e-4)), "mismatch (n=20)"

    print("KERNEL_OK")
</pallas_src>

<mosaic_0001>
module attributes {stable_mosaic.version = 11 : i64} {
  func.func @_node_embed_kernel(%arg0: i32, %arg1: memref<128x128xf32, #tpu.memory_space<vmem>>, %arg2: memref<128x128xf32, #tpu.memory_space<vmem>>, %arg3: memref<1x128xf32, #tpu.memory_space<vmem>>, %arg4: memref<128x128xf32, #tpu.memory_space<vmem>>) attributes {dimension_semantics = [#tpu.dimension_semantics<parallel>], iteration_bounds = array<i64: 1>, scalar_prefetch = 0 : i64, scratch_operands = 0 : i64, tpu.core_type = #tpu.core_type<tc>, window_params = [{transform_indices = @transform_0, window_bounds = array<i64: 128, 128>}, {pipeline_mode = #tpu.pipeline_mode<synchronous>, transform_indices = @transform_1, window_bounds = array<i64: 128, 128>}, {pipeline_mode = #tpu.pipeline_mode<synchronous>, transform_indices = @transform_2, window_bounds = array<i64: 1, 128>}, {transform_indices = @transform_3, window_bounds = array<i64: 128, 128>}]} {
    %c0 = arith.constant 0 : index
    %c0_0 = arith.constant 0 : index
    %0 = vector.load %arg1[%c0, %c0_0] : memref<128x128xf32, #tpu.memory_space<vmem>>, vector<128x128xf32>
    %c0_1 = arith.constant 0 : index
    %c0_2 = arith.constant 0 : index
    %1 = vector.load %arg2[%c0_1, %c0_2] : memref<128x128xf32, #tpu.memory_space<vmem>>, vector<128x128xf32>
    %cst = arith.constant dense<0.000000e+00> : vector<128x128xf32>
    %2 = tpu.matmul %0, %1, %cst {dimension_numbers = #tpu.dot_dimension_numbers<[1], [0], [0], [1], [0, 0, 1, 1], [], []>} : vector<128x128xf32>, vector<128x128xf32>, vector<128x128xf32> -> vector<128x128xf32>
    %c0_3 = arith.constant 0 : index
    %c0_4 = arith.constant 0 : index
    %3 = vector.load %arg3[%c0_3, %c0_4] : memref<1x128xf32, #tpu.memory_space<vmem>>, vector<1x128xf32>
    %4 = vector.broadcast %3 : vector<1x128xf32> to vector<128x128xf32>
    %5 = arith.addf %2, %4 : vector<128x128xf32>
    %cst_5 = arith.constant 3.000000e+00 : f32
    %6 = vector.broadcast %cst_5 : f32 to vector<128x128xf32>
    %7 = arith.mulf %6, %5 : vector<128x128xf32>
    %8 = math.tanh %7 : vector<128x128xf32>
    %c128_i32 = arith.constant 128 : i32
    %9 = arith.muli %arg0, %c128_i32 : i32
    %10 = tpu.iota {dimensions = array<i32: 0>} : vector<128x128xi32>
    %11 = vector.broadcast %9 : i32 to vector<128x128xi32>
    %12 = arith.addi %11, %10 : vector<128x128xi32>
    %c16_i32 = arith.constant 16 : i32
    %13 = vector.broadcast %c16_i32 : i32 to vector<128x128xi32>
    %14 = arith.cmpi slt, %12, %13 : vector<128x128xi32>
    %cst_6 = arith.constant 0.000000e+00 : f32
    %15 = vector.broadcast %cst_6 : f32 to vector<128x128xf32>
    %16 = arith.select %14, %8, %15 : vector<128x128xi1>, vector<128x128xf32>
    %c0_7 = arith.constant 0 : index
    %c0_8 = arith.constant 0 : index
    %17 = vector.load %arg4[%c0_7, %c0_8] : memref<128x128xf32, #tpu.memory_space<vmem>>, vector<128x128xf32>
    tpu.vector_store %arg4[%c0_7, %c0_8], %16 {strides = array<i32>} : memref<128x128xf32, #tpu.memory_space<vmem>>, vector<128x128xf32>,
    return
  }
  func.func @transform_0(%arg0: i32) -> (i32, i32) {
    %c0_i32 = arith.constant 0 : i32
    %c0_i32_0 = arith.constant 0 : i32
    return %arg0, %c0_i32 : i32, i32
  }
  func.func @transform_1(%arg0: i32) -> (i32, i32) {
    %c0_i32 = arith.constant 0 : i32
    %c0_i32_0 = arith.constant 0 : i32
    %c0_i32_1 = arith.constant 0 : i32
    return %c0_i32, %c0_i32_0 : i32, i32
  }
  func.func @transform_2(%arg0: i32) -> (i32, i32) {
    %c0_i32 = arith.constant 0 : i32
    %c0_i32_0 = arith.constant 0 : i32
    %c0_i32_1 = arith.constant 0 : i32
    return %c0_i32, %c0_i32_0 : i32, i32
  }
  func.func @transform_3(%arg0: i32) -> (i32, i32) {
    %c0_i32 = arith.constant 0 : i32
    %c0_i32_0 = arith.constant 0 : i32
    return %arg0, %c0_i32 : i32, i32
  }
}

</mosaic_0001>

<bundles_post_ra>
// kernel: tpu_custom_call.1
= control target key start
LH: loop header
LB: loop body
LE: loop exit
PB: predicated region body
PF: predicated region fallthrough
CT: control target
= control target key end

     0   :  { %8 = vsyncpa [#allocation3], 0  ;;  %s604_s0 = inlined_call_operand.hbm [shape: f32[128,128], index: 0, kind: input, shape index: {}]   ;;  %s605_s1 = inlined_call_operand.hbm [shape: f32[128,128], index: 1, kind: input, shape index: {}]   ;;  %s606_s2 = inlined_call_operand.vmem [shape: f32[1,128], index: 2, kind: input, shape index: {}]   ;;  %s607_s3 = inlined_call_operand.hbm [shape: f32[128,128], index: 3, kind: output, shape index: {}]  }
   0x1   :  { %9 = vsyncpa [#allocation6], 0 }
   0x2   :  { %10 = vsyncpa [#allocation4], 0  ;;  %s557_s12 = smov [#allocation2]  }
   0x3   :  { %s16_s13 = sshll.u32 %s557_s12, 4  ;;  %s17_s13 = int_to_ptr.vmem [resolvable:$true] %s16_s13 }
   0x4   :  { %s499_s14 = scalar_lea.vmem %s17_s13, 2048  ;;  %p504_p1 = scmp.lt.s32.totalorder %s17_s13, %s17_s13 }
   0x5   :  { %p500_p0 = scmp.ne.s32.totalorder %s17_s13, %s499_s14  ;;  %p505_p2 = scmp.lt.s32.totalorder %s499_s14, %s499_s14 }
   0x7   :  { %p506_p3 = por %p505_p2, %p504_p1 }
   0x9   :  { %p507_p4 = pnand %p506_p3, %p500_p0 }
   0xb   :  { %510 = shalt.err (!%p507_p4)
}
   0xc   :  { %s558_s15 = smov 128   ;;  %s559_s16 = smov 8  }
   0xd   :  { %22 = dma.hbm_to_vmem [thread:$0]  %s604_s0, 2048, %s17_s13, [#allocation3], %s558_s15, %s558_s15, %s559_s16  }
   0xe   :  { %s560_s19 = smov [#allocation5]  }
   0xf   :  { %s28_s20 = sshll.u32 %s560_s19, 4  ;;  %s29_s20 = int_to_ptr.vmem [resolvable:$true] %s28_s20 }
  0x10   :  { %s519_s21 = scalar_lea.vmem %s29_s20, 2048  ;;  %p524_p6 = scmp.lt.s32.totalorder %s29_s20, %s29_s20 }
  0x11   :  { %p520_p5 = scmp.ne.s32.totalorder %s29_s20, %s519_s21  ;;  %p525_p7 = scmp.lt.s32.totalorder %s519_s21, %s519_s21 }
  0x13   :  { %p526_p8 = por %p525_p7, %p524_p6 }
  0x15   :  { %p527_p9 = pnand %p526_p8, %p520_p5 }
  0x17   :  { %530 = shalt.err (!%p527_p9)
}
  0x18   :  { %34 = dma.hbm_to_vmem [thread:$0]  %s605_s1, 2048, %s29_s20, [#allocation6], %s558_s15, %s558_s15, %s559_s16  }
  0x19   :  { %551 = dma.done.wait [#allocation3], 2048  }
  0x1a   :  { %552 = vsyncadd [#allocation3], 4294965248 }
  0x1b   :  { %553 = dma.done.wait [#allocation6], 2048  }
  0x1c   :  { %554 = vsyncadd [#allocation6], 4294965248  ;;  %v74_v0 = vld [vmem:[#allocation5 + $0x78] sm:$0xff]  ;;  %v73_v1 = vld [vmem:[#allocation5 + $0x70] sm:$0xff]  ;;  %v561_v32 = vmov 0.0  }
  0x1d   :  { %393 = vmatprep.subr.mxu0 %v74_v0  ;;  %449 = vmatprep.subr.mxu1 %v74_v0  ;;  %v72_v2 = vld [vmem:[#allocation5 + $0x68] sm:$0xff]  ;;  %v71_v3 = vld [vmem:[#allocation5 + $0x60] sm:$0xff]  ;;  %v70_v4 = vld [vmem:[#allocation5 + $0x58] sm:$0xff]  ;;  %328 = vst [vmem:[#allocation7 + $0x10] sm:$0xff] %v561_v32 }
  0x1e   :  { %394 = vmatpush3.msra.mxu0 %v74_v0  ;;  %465 = vmatpush3.msra.mxu1 %v74_v0  ;;  %v69_v5 = vld [vmem:[#allocation5 + $0x50] sm:$0xff]  ;;  %v68_v6 = vld [vmem:[#allocation5 + $0x48] sm:$0xff]  ;;  %v67_v7 = vld [vmem:[#allocation5 + $0x40] sm:$0xff]  ;;  %329 = vst [vmem:[#allocation7 + $0x18] sm:$0xff] %v561_v32 }
  0x1f   :  { %395 = vmatprep.subr.mxu0 %v73_v1  ;;  %450 = vmatprep.subr.mxu1 %v73_v1  ;;  %v66_v8 = vld [vmem:[#allocation5 + $0x38] sm:$0xff]  ;;  %v65_v9 = vld [vmem:[#allocation5 + $0x30] sm:$0xff]  ;;  %v64_v10 = vld [vmem:[#allocation5 + $0x28] sm:$0xff]  ;;  %330 = vst [vmem:[#allocation7 + $0x20] sm:$0xff] %v561_v32 }
  0x20   :  { %396 = vmatpush3.msra.mxu0 %v73_v1  ;;  %466 = vmatpush3.msra.mxu1 %v73_v1  ;;  %v63_v11 = vld [vmem:[#allocation5 + $0x20] sm:$0xff]  ;;  %v62_v12 = vld [vmem:[#allocation5 + $0x18] sm:$0xff]  ;;  %v61_v13 = vld [vmem:[#allocation5 + $0x10] sm:$0xff]  ;;  %331 = vst [vmem:[#allocation7 + $0x28] sm:$0xff] %v561_v32 }
  0x21   :  { %397 = vmatprep.subr.mxu0 %v72_v2  ;;  %451 = vmatprep.subr.mxu1 %v72_v2  ;;  %v43_v14 = vld [vmem:[#allocation2] sm:$0xff]  ;;  %v60_v15 = vld [vmem:[#allocation5 + $0x8] sm:$0xff]  ;;  %v45_v19 = vld [vmem:[#allocation2 + $0x10] sm:$0xff]  ;;  %332 = vst [vmem:[#allocation7 + $0x30] sm:$0xff] %v561_v32 }
  0x22   :  { %398 = vmatpush3.msra.mxu0 %v72_v2  ;;  %467 = vmatpush3.msra.mxu1 %v72_v2  ;;  %v59_v16 = vld [vmem:[#allocation5] sm:$0xff]  ;;  %v44_v17 = vld [vmem:[#allocation2 + $0x8] sm:$0xff]  ;;  %v53_v21 = vld [vmem:[#allocation2 + $0x50] sm:$0xff]  ;;  %333 = vst [vmem:[#allocation7 + $0x38] sm:$0xff] %v561_v32 }
  0x23   :  { %399 = vmatprep.subr.mxu0 %v71_v3  ;;  %452 = vmatprep.subr.mxu1 %v71_v3  ;;  %v51_v18 = vld [vmem:[#allocation2 + $0x40] sm:$0xff]  ;;  %v52_v20 = vld [vmem:[#allocation2 + $0x48] sm:$0xff]  ;;  %v46_v22 = vld [vmem:[#allocation2 + $0x18] sm:$0xff]  ;;  %334 = vst [vmem:[#allocation7 + $0x40] sm:$0xff] %v561_v32 }
  0x24   :  { %400 = vmatpush3.msra.mxu0 %v71_v3  ;;  %468 = vmatpush3.msra.mxu1 %v71_v3  ;;  %v47_v23 = vld [vmem:[#allocation2 + $0x20] sm:$0xff]  ;;  %v54_v24 = vld [vmem:[#allocation2 + $0x58] sm:$0xff]  ;;  %v48_v26 = vld [vmem:[#allocation2 + $0x28] sm:$0xff]  ;;  %335 = vst [vmem:[#allocation7 + $0x48] sm:$0xff] %v561_v32 }
  0x25   :  { %401 = vmatprep.subr.mxu0 %v70_v4  ;;  %453 = vmatprep.subr.mxu1 %v70_v4  ;;  %v55_v25 = vld [vmem:[#allocation2 + $0x60] sm:$0xff]  ;;  %v49_v27 = vld [vmem:[#allocation2 + $0x30] sm:$0xff]  ;;  %v56_v28 = vld [vmem:[#allocation2 + $0x68] sm:$0xff]  ;;  %336 = vst [vmem:[#allocation7 + $0x50] sm:$0xff] %v561_v32 }
  0x26   :  { %402 = vmatpush3.msra.mxu0 %v70_v4  ;;  %469 = vmatpush3.msra.mxu1 %v70_v4  ;;  %v57_v29 = vld [vmem:[#allocation2 + $0x70] sm:$0xff]  ;;  %v50_v30 = vld [vmem:[#allocation2 + $0x38] sm:$0xff]  ;;  %337 = vst [vmem:[#allocation7 + $0x58] sm:$0xff] %v561_v32  ;;  %338 = vst [vmem:[#allocation7 + $0x60] sm:$0xff] %v561_v32 }
  0x27   :  { %403 = vmatprep.subr.mxu0 %v69_v5  ;;  %454 = vmatprep.subr.mxu1 %v69_v5  ;;  %v58_v31 = vld [vmem:[#allocation2 + $0x78] sm:$0xff]  ;;  %339 = vst [vmem:[#allocation7 + $0x68] sm:$0xff] %v561_v32  ;;  %340 = vst [vmem:[#allocation7 + $0x70] sm:$0xff] %v561_v32  ;;  %v360_v33 = vld [vmem:[%s606_s2] ss:$0 sm:$0xff]  ;;  %s562_s2 = smov [#allocation7]  }
  0x28   :  { %404 = vmatpush3.msra.mxu0 %v69_v5  ;;  %470 = vmatpush3.msra.mxu1 %v69_v5  ;;  %341 = vst [vmem:[#allocation7 + $0x78] sm:$0xff] %v561_v32  ;;  %s347_s24 = sshll.u32 %s562_s2, 4  ;;  %s348_s24 = int_to_ptr.vmem [resolvable:$true] %s347_s24 }
  0x29   :  { %405 = vmatprep.subr.mxu0 %v68_v6  ;;  %455 = vmatprep.subr.mxu1 %v68_v6  ;;  %s531_s25 = scalar_lea.vmem %s348_s24, 2048  ;;  %p536_p11 = scmp.lt.s32.totalorder %s348_s24, %s348_s24 }
  0x2a   :  { %406 = vmatpush3.msra.mxu0 %v68_v6  ;;  %471 = vmatpush3.msra.mxu1 %v68_v6  ;;  %p532_p10 = scmp.ne.s32.totalorder %s348_s24, %s531_s25  ;;  %p537_p12 = scmp.lt.s32.totalorder %s531_s25, %s531_s25 }
  0x2b   :  { %407 = vmatprep.subr.mxu0 %v67_v7  ;;  %456 = vmatprep.subr.mxu1 %v67_v7 }
  0x2c   :  { %408 = vmatpush3.msra.mxu0 %v67_v7  ;;  %472 = vmatpush3.msra.mxu1 %v67_v7  ;;  %p538_p13 = por %p537_p12, %p536_p11 }
  0x2d   :  { %409 = vmatprep.subr.mxu0 %v66_v8  ;;  %457 = vmatprep.subr.mxu1 %v66_v8 }
  0x2e   :  { %410 = vmatpush3.msra.mxu0 %v66_v8  ;;  %473 = vmatpush3.msra.mxu1 %v66_v8  ;;  %p539_p0 = pnand %p538_p13, %p532_p10 }
  0x2f   :  { %411 = vmatprep.subr.mxu0 %v65_v9  ;;  %458 = vmatprep.subr.mxu1 %v65_v9 }
  0x30   :  { %412 = vmatpush3.msra.mxu0 %v65_v9  ;;  %474 = vmatpush3.msra.mxu1 %v65_v9 }
  0x31   :  { %413 = vmatprep.subr.mxu0 %v64_v10  ;;  %459 = vmatprep.subr.mxu1 %v64_v10 }
  0x32   :  { %414 = vmatpush3.msra.mxu0 %v64_v10  ;;  %475 = vmatpush3.msra.mxu1 %v64_v10 }
  0x33   :  { %415 = vmatprep.subr.mxu0 %v63_v11  ;;  %460 = vmatprep.subr.mxu1 %v63_v11 }
  0x34   :  { %416 = vmatpush3.msra.mxu0 %v63_v11  ;;  %476 = vmatpush3.msra.mxu1 %v63_v11 }
  0x35   :  { %417 = vmatprep.subr.mxu0 %v62_v12  ;;  %461 = vmatprep.subr.mxu1 %v62_v12 }
  0x36   :  { %418 = vmatpush3.msra.mxu0 %v62_v12  ;;  %477 = vmatpush3.msra.mxu1 %v62_v12 }
  0x37   :  { %419 = vmatprep.subr.mxu0 %v61_v13  ;;  %425 = vmatprep.mubr.f32.mxu0 %v43_v14 }
  0x38   :  { %420 = vmatpush3.msra.mxu0 %v61_v13  ;;  %462 = vmatprep.subr.mxu1 %v61_v13 }
  0x39   :  { %421 = vmatprep.subr.mxu0 %v60_v15  ;;  %478 = vmatpush3.msra.mxu1 %v61_v13 }
  0x3a   :  { %422 = vmatpush3.msra.mxu0 %v60_v15  ;;  %463 = vmatprep.subr.mxu1 %v60_v15 }
  0x3b   :  { %423 = vmatprep.subr.mxu0 %v59_v16  ;;  %479 = vmatpush3.msra.mxu1 %v60_v15 }
  0x3c   :  { %424 = vmatpush3.msra.mxu0 %v59_v16  ;;  %464 = vmatprep.subr.mxu1 %v59_v16 }
  0x3d   :  { %426 = vmatmul.mubr.f32.vlgmr.msra.gmra.mxu0 %v44_v17  ;;  %480 = vmatpush3.msra.mxu1 %v59_v16 }
  0x3e   :  { %437 = vmatprep.mubr.f32.mxu1 %v51_v18  ;;  %428 = vmatprep.mubr.f32.mxu0 %v45_v19 }
  0x3f   :  { %438 = vmatmul.mubr.f32.vlgmr.msra.gmra.mxu1 %v52_v20 }
  0x40   :  { %440 = vmatprep.mubr.f32.mxu1 %v53_v21 }
  0x41   :  { %429 = vmatmul.mubr.f32.gmra.mxu0 %v46_v22 }
  0x42   :  { %431 = vmatprep.mubr.f32.mxu0 %v47_v23 }
  0x43   :  { %441 = vmatmul.mubr.f32.gmra.mxu1 %v54_v24 }
  0x44   :  { %443 = vmatprep.mubr.f32.mxu1 %v55_v25 }
  0x45   :  { %432 = vmatmul.mubr.f32.gmra.mxu0 %v48_v26 }
  0x46   :  { %434 = vmatprep.mubr.f32.mxu0 %v49_v27 }
  0x47   :  { %444 = vmatmul.mubr.f32.gmra.mxu1 %v56_v28 }
  0x48   :  { %446 = vmatprep.mubr.f32.mxu1 %v57_v29 }
  0x49   :  { %435 = vmatmul.mubr.f32.gmra.mxu0 %v50_v30 }
  0x4b   :  { %447 = vmatmul.mubr.f32.gmra.mxu1 %v58_v31 }
  0xfd   :  { %v427_v34 = vpop.f32.mrf.mxu0 }
  0xfe   :  { %v154_v35 = vadd.f32 %v427_v34, %v360_v33 }
  0xff   :  { %v148_v36 = vpop.f32.mrf.mxu0  ;;  %v439_v37 = vpop.f32.mrf.mxu1 }
 0x100   :  { %v228_v38 = vmul.f32 3.0, %v154_v35  ;;  %v149_v39 = vadd.f32 %v360_v33, %v148_v36 }
 0x101   :  { %v188_v40 = vpop.f32.mrf.mxu1  ;;  %v430_v41 = vpop.f32.mrf.mxu0 }
 0x102   :  { %487 = vtanh.f32 %v228_v38  ;;  %v227_v42 = vmul.f32 3.0, %v149_v39 }
 0x103   :  { %v442_v43 = vpop.f32.mrf.mxu1  ;;  %v158_v44 = vpop.f32.mrf.mxu0 }
 0x104   :  { %489 = vtanh.f32 %v227_v42 }
 0x105   :  { %v198_v45 = vpop.f32.mrf.mxu1  ;;  %v433_v46 = vpop.f32.mrf.mxu0 }
 0x107   :  { %v445_v47 = vpop.f32.mrf.mxu1  ;;  %v168_v48 = vpop.f32.mrf.mxu0 }
 0x109   :  { %v208_v49 = vpop.f32.mrf.mxu1  ;;  %v436_v50 = vpop.f32.mrf.mxu0 }
 0x10b   :  { %v448_v51 = vpop.f32.mrf.mxu1  ;;  %v178_v52 = vpop.f32.mrf.mxu0 }
 0x10d   :  { %v218_v53 = vpop.f32.mrf.mxu1 }
 0x10f   :  { %v488_v54 = vpop.eup %487 }
 0x110   :  { %327 = vst [vmem:[#allocation7 + $0x8] sm:$0xff] %v488_v54 }
 0x111   :  { %v490_v55 = vpop.eup %489 }
 0x112   :  { %326 = vst [vmem:[#allocation7] sm:$0xff] %v490_v55 }
 0x113   :  { %542 = shalt.err (!%p539_p0)
}
 0x114   :  { %353 = dma.vmem_to_hbm [thread:$0]  %s348_s24, 2048, %s607_s3, [#allocation4], %s558_s15, %s558_s15, %s559_s16  }
 0x115   :  { %555 = dma.done.wait [#allocation4], 2048  }
 0x116   :  { %556 = vsyncadd [#allocation4], 4294965248 }
 0x117   :  { %357 = vsyncpa [#allocation3], 1 }
 0x118   :  { %358 = vsyncpa [#allocation6], 1 }
 0x119   :  { %359 = vsyncpa [#allocation4], 1 }

</bundles_post_ra>
